<compile_context>
chip_gen: v6e
topology: v6e:2x2x1
jax: 0.10.0
libtpu: 0.0.40
codegen_flags: <defaults>
</compile_context>

<pallas_src>
import jax
import jax.numpy as jnp
from jax.experimental import pallas as pl
from jax.experimental.pallas import tpu as pltpu


def _conv_bn_silu_kernel(x_ref, w_ref, b_ref, o_ref):
    """Fused conv(KxK, s=1) + BN(eval) + SiLU, lane-dense banded-Toeplitz formulation.

    x_ref: (NB, Hp, LP)   bf16 packed input (lane j = wp*C1 + c1, zero-padded to LP lanes)
    w_ref: (K, LP, CO)    bf16 banded-Toeplitz conv weights with BN scale folded in
    b_ref: (1, CO)        f32 folded BN bias, tiled per output pixel
    o_ref: (NB, H, CO)    lane-dense output (lane o = w*C2 + c2)
    """
    NB, H, CO = o_ref.shape
    LP = x_ref.shape[-1]
    K = w_ref.shape[0]

    # K accumulating MXU matmuls over the kh taps (bf16 operands, f32 accumulator).
    # No im2col concatenate: avoids materializing the (NB*H, K*LP) copy in VMEM.
    def tap(kh):
        lhs = x_ref[:, kh:kh + H, :].reshape(NB * H, LP)              # bf16, lane-dense
        return jnp.dot(lhs, w_ref[kh], preferred_element_type=jnp.float32)

    acc = tap(0)
    for kh in range(1, K):                                            # K is static -> unrolled
        acc = acc + tap(kh)                                           # (NB*H, CO) f32

    # f32 epilogue: folded-BN bias + SiLU with a numerically stable sigmoid.
    # exp -> EUP, divide -> EUP reciprocal (essentially free next to the matmuls).
    y = acc + b_ref[...]
    z = jnp.exp(-jnp.abs(y))
    inv = pl.reciprocal(1.0 + z, approx=True)
    sig = jnp.where(y >= 0, inv, z * inv)
    o_ref[...] = (y * sig).reshape(NB, H, CO).astype(o_ref.dtype)


def conv_bn_silu(x_nchw, w_pt, gamma, beta, running_mean, running_var,
                 *, stride=1, eps=1e-5, batch_block=None):
    """Equivalent of Conv.forward (eval-mode BN). x_nchw: (N, C1, H, W)."""
    assert stride == 1, "this kernel implements the default s=1 path"
    N, C1, H, W = x_nchw.shape
    C2, C1_w, K, K2 = w_pt.shape
    assert C1 == C1_w and K == K2 and K % 2 == 1
    pad = K // 2                                    # autopad(k) with d=1, p=None
    Hp, Wp = H + 2 * pad, W + 2 * pad
    LP = pl.cdiv(Wp * C1, 128) * 128                # lane-padded packed input width
    CO = W * C2                                     # lane-dense output width (= 128 here)
    out_dtype = x_nchw.dtype

    # ---- one-time parameter folding (plain JAX, f32) ----
    scale = gamma / jnp.sqrt(running_var + eps)                       # BN scale
    bias = beta - running_mean * scale                                # BN bias
    ws = (jnp.transpose(w_pt, (2, 3, 1, 0)).astype(jnp.float32)
          * scale[None, None, None, :])                               # (K, K, C1, C2)

    # Banded Toeplitz RHS per kh: R[kh, wp*C1 + c1, w*C2 + c2] = ws[kh, wp - w, c1, c2].
    rows = []
    for kh in range(K):
        Rk = jnp.zeros((Wp, C1, W, C2), jnp.float32)
        for kw in range(K):
            sel = jnp.eye(Wp, W, k=-kw, dtype=jnp.float32)            # sel[w+kw, w] = 1
            Rk = Rk + jnp.einsum('pw,cd->pcwd', sel, ws[kh, kw])
        rows.append(Rk.reshape(Wp * C1, CO))
    R = jnp.stack(rows, 0)                                            # (K, Wp*C1, CO)
    R = jnp.pad(R, ((0, 0), (0, LP - Wp * C1), (0, 0))).astype(jnp.bfloat16)
    # TODO(synk): for production W/C1/C2, W-tile the output and feed only the K*C1 nonzero
    # contraction rows of this banded RHS per tile (R is O(W^2*C1*C2) otherwise and cannot
    # fit v7x's 64 MiB VMEM; tiling also removes the ~LP/(K*C1) wasted MXU FLOPs).

    bias_t = jnp.tile(bias, W).reshape(1, CO).astype(jnp.float32)     # f32 epilogue (v5e-safe)

    # ---- input packing: NCHW -> NHWC (bf16) -> ONE pad (halo + lane pad) -> (N, Hp, LP) ----
    x_nhwc = jnp.transpose(x_nchw, (0, 2, 3, 1)).astype(jnp.bfloat16)
    lane_pad = LP - Wp * C1
    if lane_pad % C1 == 0:
        x_pack = jnp.pad(x_nhwc, ((0, 0), (pad, pad), (pad, pad + lane_pad // C1), (0, 0)))
        x_pack = x_pack.reshape(N, Hp, LP)
    else:
        x_pack = jnp.pad(x_nhwc, ((0, 0), (pad, pad), (pad, pad), (0, 0))).reshape(N, Hp, Wp * C1)
        x_pack = jnp.pad(x_pack, ((0, 0), (0, 0), (0, lane_pad)))
    # TODO(synk): fold the halo/lane zero-padding into the kernel (DMA unpadded rows, zero the
    # halo in VMEM) to drop this extra HBM round trip on mem-bound v5e/v6e.

    if batch_block is None:
        # Give >=2 grid steps when N allows (v7x has 2 TensorCores); for production shapes set
        # batch_block (or add halo'd H-row tiling) so NB*H is a multiple of 256 (128 on v5e).
        NB = N if N == 1 else max(d for d in range(1, N) if N % d == 0)
    else:
        NB = batch_block
    assert N % NB == 0

    out_itemsize = jnp.dtype(out_dtype).itemsize
    vmem_need = (2 * NB * Hp * LP * 2               # double-buffered bf16 input block
                 + 2 * NB * H * CO * out_itemsize   # double-buffered output block
                 + 2 * K * LP * CO * 2              # constant RHS (double-buffered by default)
                 + 2 * CO * 4                       # constant bias
                 + 2 * NB * H * CO * 4)             # f32 accumulator + epilogue temporaries
    vmem_limit = int(min(max(4 * vmem_need, 16 << 20), 48 << 20))     # safe on v7x's 64 MiB
    # TODO(synk): once R is large, mark the constant-index R/bias BlockSpecs with
    # pipeline_mode=pl.Buffered(1) so they are not double-buffered in VMEM.

    out_packed = pl.pallas_call(
        _conv_bn_silu_kernel,
        out_shape=jax.ShapeDtypeStruct((N, H, CO), out_dtype),
        grid_spec=pltpu.PrefetchScalarGridSpec(
            num_scalar_prefetch=0,
            grid=(N // NB,),
            in_specs=[
                pl.BlockSpec((NB, Hp, LP), lambda n: (n, 0, 0)),
                pl.BlockSpec((K, LP, CO), lambda n: (0, 0, 0)),
                pl.BlockSpec((1, CO), lambda n: (0, 0)),
            ],
            out_specs=pl.BlockSpec((NB, H, CO), lambda n: (n, 0, 0)),
        ),
        compiler_params=pltpu.CompilerParams(
            dimension_semantics=("parallel",),
            vmem_limit_bytes=vmem_limit),
    )(x_pack, R, bias_t)

    out_nhwc = out_packed.reshape(N, H, W, C2)
    return jnp.transpose(out_nhwc, (0, 3, 1, 2))                      # back to NCHW


def _reference(x_nchw, w_pt, gamma, beta, running_mean, running_var, *, eps=1e-5):
    """Pure-JAX f32 reference (lax conv) for correctness checking."""
    x_nhwc = jnp.transpose(x_nchw, (0, 2, 3, 1)).astype(jnp.float32)
    w_hwio = jnp.transpose(w_pt, (2, 3, 1, 0)).astype(jnp.float32)
    y = jax.lax.conv_general_dilated(
        x_nhwc, w_hwio, window_strides=(1, 1), padding="SAME",
        dimension_numbers=("NHWC", "HWIO", "NHWC"))
    scale = gamma / jnp.sqrt(running_var + eps)
    bias = beta - running_mean * scale
    y = y * scale + bias
    y = y * jax.nn.sigmoid(y)
    return jnp.transpose(y, (0, 3, 1, 2))


if __name__ == "__main__":
    # Module config: Conv(c1=4, c2=8, k=3, s=1) -> autopad gives p=1.
    N, C1, H, W = 2, 4, 16, 16
    C2, K = 8, 3

    key = jax.random.PRNGKey(0)
    kx, kw, kg, kb, km, kv = jax.random.split(key, 6)

    x = jax.random.normal(kx, (N, C1, H, W), dtype=jnp.float32)
    w_pt = jax.random.normal(kw, (C2, C1, K, K), dtype=jnp.float32) * 0.1
    gamma = 1.0 + 0.1 * jax.random.normal(kg, (C2,), dtype=jnp.float32)
    beta = 0.1 * jax.random.normal(kb, (C2,), dtype=jnp.float32)
    running_mean = 0.1 * jax.random.normal(km, (C2,), dtype=jnp.float32)
    running_var = jax.random.uniform(kv, (C2,), dtype=jnp.float32, minval=0.5, maxval=1.5)

    out = conv_bn_silu(x, w_pt, gamma, beta, running_mean, running_var)
    out = jax.block_until_ready(out)

    ref = _reference(x, w_pt, gamma, beta, running_mean, running_var)
    assert out.shape == (N, C2, H, W)
    err = jnp.max(jnp.abs(out - ref))
    # bf16 MXU operands (f32 accumulation) vs f32 reference -> loosened tolerance.
    assert jnp.allclose(out, ref, atol=5e-2, rtol=5e-2), f"max abs err {err}"

    print("KERNEL_OK")
</pallas_src>

<mosaic_0001>
module attributes {stable_mosaic.version = 11 : i64} {
  func.func @_conv_bn_silu_kernel(%arg0: i32, %arg1: memref<1x18x128xbf16, #tpu.memory_space<vmem>>, %arg2: memref<3x128x128xbf16, #tpu.memory_space<vmem>>, %arg3: memref<1x128xf32, #tpu.memory_space<vmem>>, %arg4: memref<1x16x128xf32, #tpu.memory_space<vmem>>) attributes {dimension_semantics = [#tpu.dimension_semantics<parallel>], iteration_bounds = array<i64: 2>, scalar_prefetch = 0 : i64, scratch_operands = 0 : i64, tpu.core_type = #tpu.core_type<tc>, window_params = [{transform_indices = @transform_0, window_bounds = array<i64: 1, 18, 128>}, {pipeline_mode = #tpu.pipeline_mode<synchronous>, transform_indices = @transform_1, window_bounds = array<i64: 3, 128, 128>}, {pipeline_mode = #tpu.pipeline_mode<synchronous>, transform_indices = @transform_2, window_bounds = array<i64: 1, 128>}, {transform_indices = @transform_3, window_bounds = array<i64: 1, 16, 128>}]} {
    %c0 = arith.constant 0 : index
    %c0_0 = arith.constant 0 : index
    %c0_1 = arith.constant 0 : index
    %0 = vector.load %arg1[%c0, %c0_0, %c0_1] : memref<1x18x128xbf16, #tpu.memory_space<vmem>>, vector<1x16x128xbf16>
    %1 = vector.shape_cast %0 : vector<1x16x128xbf16> to vector<16x128xbf16>
    %c0_2 = arith.constant 0 : index
    %c0_3 = arith.constant 0 : index
    %c0_4 = arith.constant 0 : index
    %2 = vector.load %arg2[%c0_2, %c0_3, %c0_4] : memref<3x128x128xbf16, #tpu.memory_space<vmem>>, vector<1x128x128xbf16>
    %3 = vector.shape_cast %2 : vector<1x128x128xbf16> to vector<128x128xbf16>
    %cst = arith.constant dense<0.000000e+00> : vector<16x128xf32>
    %4 = tpu.matmul %1, %3, %cst {dimension_numbers = #tpu.dot_dimension_numbers<[1], [0], [0], [1], [0, 0, 1, 1], [], []>} : vector<16x128xbf16>, vector<128x128xbf16>, vector<16x128xf32> -> vector<16x128xf32>
    %c0_5 = arith.constant 0 : index
    %c1 = arith.constant 1 : index
    %c0_6 = arith.constant 0 : index
    %5 = vector.load %arg1[%c0_5, %c1, %c0_6] : memref<1x18x128xbf16, #tpu.memory_space<vmem>>, vector<1x16x128xbf16>
    %6 = vector.shape_cast %5 : vector<1x16x128xbf16> to vector<16x128xbf16>
    %c1_7 = arith.constant 1 : index
    %c0_8 = arith.constant 0 : index
    %c0_9 = arith.constant 0 : index
    %7 = vector.load %arg2[%c1_7, %c0_8, %c0_9] : memref<3x128x128xbf16, #tpu.memory_space<vmem>>, vector<1x128x128xbf16>
    %8 = vector.shape_cast %7 : vector<1x128x128xbf16> to vector<128x128xbf16>
    %cst_10 = arith.constant dense<0.000000e+00> : vector<16x128xf32>
    %9 = tpu.matmul %6, %8, %cst_10 {dimension_numbers = #tpu.dot_dimension_numbers<[1], [0], [0], [1], [0, 0, 1, 1], [], []>} : vector<16x128xbf16>, vector<128x128xbf16>, vector<16x128xf32> -> vector<16x128xf32>
    %10 = arith.addf %4, %9 : vector<16x128xf32>
    %c0_11 = arith.constant 0 : index
    %c2 = arith.constant 2 : index
    %c0_12 = arith.constant 0 : index
    %11 = vector.load %arg1[%c0_11, %c2, %c0_12] : memref<1x18x128xbf16, #tpu.memory_space<vmem>>, vector<1x16x128xbf16>
    %12 = vector.shape_cast %11 : vector<1x16x128xbf16> to vector<16x128xbf16>
    %c2_13 = arith.constant 2 : index
    %c0_14 = arith.constant 0 : index
    %c0_15 = arith.constant 0 : index
    %13 = vector.load %arg2[%c2_13, %c0_14, %c0_15] : memref<3x128x128xbf16, #tpu.memory_space<vmem>>, vector<1x128x128xbf16>
    %14 = vector.shape_cast %13 : vector<1x128x128xbf16> to vector<128x128xbf16>
    %cst_16 = arith.constant dense<0.000000e+00> : vector<16x128xf32>
    %15 = tpu.matmul %12, %14, %cst_16 {dimension_numbers = #tpu.dot_dimension_numbers<[1], [0], [0], [1], [0, 0, 1, 1], [], []>} : vector<16x128xbf16>, vector<128x128xbf16>, vector<16x128xf32> -> vector<16x128xf32>
    %16 = arith.addf %10, %15 : vector<16x128xf32>
    %c0_17 = arith.constant 0 : index
    %c0_18 = arith.constant 0 : index
    %17 = vector.load %arg3[%c0_17, %c0_18] : memref<1x128xf32, #tpu.memory_space<vmem>>, vector<1x128xf32>
    %18 = vector.broadcast %17 : vector<1x128xf32> to vector<16x128xf32>
    %19 = arith.addf %16, %18 : vector<16x128xf32>
    %20 = math.absf %19 : vector<16x128xf32>
    %cst_19 = arith.constant 0.000000e+00 : f32
    %21 = vector.broadcast %cst_19 : f32 to vector<16x128xf32>
    %22 = arith.subf %21, %20 : vector<16x128xf32>
    %23 = math.exp %22 : vector<16x128xf32>
    %cst_20 = arith.constant 1.000000e+00 : f32
    %24 = vector.broadcast %cst_20 : f32 to vector<16x128xf32>
    %25 = arith.addf %24, %23 : vector<16x128xf32>
    %26 = tpu.reciprocal %25 {approx = true} : vector<16x128xf32> -> vector<16x128xf32>
    %cst_21 = arith.constant 0.000000e+00 : f32
    %27 = vector.broadcast %cst_21 : f32 to vector<16x128xf32>
    %28 = arith.cmpf oge, %19, %27 : vector<16x128xf32>
    %29 = arith.mulf %23, %26 : vector<16x128xf32>
    %30 = arith.select %28, %26, %29 : vector<16x128xi1>, vector<16x128xf32>
    %31 = arith.mulf %19, %30 : vector<16x128xf32>
    %32 = vector.shape_cast %31 : vector<16x128xf32> to vector<1x16x128xf32>
    %c0_22 = arith.constant 0 : index
    %c0_23 = arith.constant 0 : index
    %c0_24 = arith.constant 0 : index
    %33 = vector.load %arg4[%c0_22, %c0_23, %c0_24] : memref<1x16x128xf32, #tpu.memory_space<vmem>>, vector<1x16x128xf32>
    tpu.vector_store %arg4[%c0_22, %c0_23, %c0_24], %32 {strides = array<i32>} : memref<1x16x128xf32, #tpu.memory_space<vmem>>, vector<1x16x128xf32>,
    return
  }
  func.func @transform_0(%arg0: i32) -> (i32, i32, i32) {
    %c0_i32 = arith.constant 0 : i32
    %c0_i32_0 = arith.constant 0 : i32
    %c0_i32_1 = arith.constant 0 : i32
    return %arg0, %c0_i32, %c0_i32_0 : i32, i32, i32
  }
  func.func @transform_1(%arg0: i32) -> (i32, i32, i32) {
    %c0_i32 = arith.constant 0 : i32
    %c0_i32_0 = arith.constant 0 : i32
    %c0_i32_1 = arith.constant 0 : i32
    %c0_i32_2 = arith.constant 0 : i32
    return %c0_i32, %c0_i32_0, %c0_i32_1 : i32, i32, i32
  }
  func.func @transform_2(%arg0: i32) -> (i32, i32) {
    %c0_i32 = arith.constant 0 : i32
    %c0_i32_0 = arith.constant 0 : i32
    %c0_i32_1 = arith.constant 0 : i32
    return %c0_i32, %c0_i32_0 : i32, i32
  }
  func.func @transform_3(%arg0: i32) -> (i32, i32, i32) {
    %c0_i32 = arith.constant 0 : i32
    %c0_i32_0 = arith.constant 0 : i32
    %c0_i32_1 = arith.constant 0 : i32
    return %arg0, %c0_i32, %c0_i32_0 : i32, i32, i32
  }
}

</mosaic_0001>

<bundles_post_ra>
// kernel: tpu_custom_call.1
= control target key start
LH: loop header
LB: loop body
LE: loop exit
PB: predicated region body
PF: predicated region fallthrough
CT: control target
= control target key end

     0   :  { %8 = vsyncpa [#allocation3], 0  ;;  %s1158_s0 = inlined_call_operand.vmem [shape: bf16[2,18,128], index: 0, kind: input, shape index: {}]   ;;  %s1159_s1 = inlined_call_operand.hbm [shape: bf16[3,128,128], index: 1, kind: input, shape index: {}]   ;;  %s1160_s2 = inlined_call_operand.vmem [shape: f32[1,128], index: 2, kind: input, shape index: {}]   ;;  %s1161_s3 = inlined_call_operand.hbm [shape: f32[2,16,128], index: 3, kind: output, shape index: {}]  }
   0x1   :  { %9 = vsyncpa [#allocation4], 0 }
   0x2   :  { %11 = vsyncpa [#allocation4 + $0x1], 0  ;;  %s999_s12 = smov 0   ;;  %s1001_s13 = smov 0  }
   0x3   :  { %s1003_s14 = smov 0   ;;  %s1005_s15 = smov 0  }
   0x4 LB: > { %s1020_s16 = sadd.s32 4294967295, %s969_s15   ;;  %s658_s17 = sadd.s32 4294967294, %s969_s15   ;;  %s969_s15 = sphi %s1005_s15, %s1169_s15   ;;  %s965_s14 = sphi %s1003_s14, %s1168_s14   ;;  %s961_s13 = sphi %s1001_s13, %s1167_s13   ;;  %s957_s12 = sphi %s999_s12, %s1166_s12  }
   0x5   : > { %s1024_s18 = sadd.s32 1, %s969_s15   ;;  %s92_s19 = sadd.s32 1, %s965_s14 }
   0x6   : > { %s89_s20 = ssub.s32 %s969_s15, %s1024_s18  ;;  %p102_p0 = scmp.ne.s32.totalorder %s965_s14, %s961_s13 }
   0x7   : > { %p90_p1 = scmp.eq.s32.totalorder %s89_s20, 0  ;;  %p103_p2 = scmp.eq.s32.totalorder %s1020_s16, 1 }
   0x8   : > { %p108_p3 = scmp.ne.s32.totalorder %s961_s13, %s957_s12  ;;  %p109_p4 = scmp.eq.s32.totalorder %s658_s17, 1 }
   0x9   : > { %s1035_s21 = scalar_select %p90_p1, %s965_s14, %s92_s19  }
   0xa   : > { %p1037_p5 = por %p103_p2, %p102_p0  ;;  %p1041_p6 = por %p109_p4, %p108_p3 }
   0xb   : > { %p659_p7 = scmp.ge.s32.totalorder %s969_s15, 1  ;;  %p116_p8 = scmp.lt.s32.totalorder %s969_s15, 3 }
   0xc   : > { %s1163_s23 = scalar_select %p1041_p6, 1, 0 }
   0xd   : > { %p802_p9 = scmp.eq.s32.totalorder %s1020_s16, 0  ;;  %p1048_p10 = pnand %p659_p7, %p116_p8 }
   0xe   : > { %s971_s25 = smov [#allocation2]  }
   0xf   : > { %s128_s26 = sshll.u32 %s971_s25, 4  ;;  %p794_p11 = pneg %p1048_p10  ;;  %s129_s26 = int_to_ptr.vmem [resolvable:$true] %s128_s26 }
  0x10   : > { %s890_s27 = scalar_lea.vmem %s129_s26, 3072  ;;  %p898_p3 = scmp.lt.s32.totalorder %s129_s26, %s129_s26 }
  0x11   : > { %p795_p12 = pnand %p802_p9, %p794_p11  ;;  %p891_p0 = scmp.ne.s32.totalorder %s129_s26, %s890_s27 }
  0x12   : > { %p899_p4 = scmp.lt.s32.totalorder %s890_s27, %s890_s27 }
  0x13   : > { %p881_p13 = pneg %p795_p12 }
  0x14   : > { %p900_p6 = por %p899_p4, %p898_p3 }
  0x15   : > { %p893_p1 = pnand %p891_p0, %p881_p13 }
  0x17   : > { %p894_p2 = pneg %p893_p1 }
  0x19   : > { %p901_p7 = pnand %p900_p6, %p894_p2 }
  0x1b   : > { %904 = shalt.err (!%p901_p7)
}
  0x1c   : > { %s972_s28 = smov 64   ;;  %s973_s29 = smov 4  }
  0x1d   : > { %797 = dma.hbm_to_vmem [thread:$0]  (!%p795_p12), %s1159_s1, 3072, %s129_s26, [#allocation3], %s972_s28, %s972_s28, %s973_s29  }
  0x1e   : > { %155 = sbr.rel (%p1048_p10) target bundleno = 358 (0x166), region = 32 }
  0x23   : > { %948 = dma.done.wait (%p802_p9), [#allocation3], 3072  }
  0x24   : > { %950 = vsyncadd (%p802_p9), [#allocation3], 4294964224  ;;  %v974_v0 = vmov 0.0   ;;  %vm975_vm0 = vmmov 0   ;;  %v844_v1 = vld [vmem:[#allocation2 + $0x78] sm:$0xff]   ;;  %p179_p6 = scmp.lt.s32.totalorder %s1020_s16, 1 }
  0x25   : > { %727 = vmatprep.subr.bf16.mxu0 %v974_v0  ;;  %747 = vmatprep.subr.bf16.mxu1 %v974_v0  ;;  %v845_v2 = vld [vmem:[#allocation2 + $0x38] sm:$0xff]   ;;  %v846_v3 = vld [vmem:[#allocation2 + $0x70] sm:$0xff]   ;;  %v848_v5 = vld [vmem:[#allocation2 + $0x68] sm:$0xff]   ;;  %vm229_vm1 = vsmask.f32 7424  ;;  %vm443_vm2 = vcmask 1046528  }
  0x26   : > { %743 = vmatprep.mubr.msk.bf16.mxu0 %vm975_vm0, %v974_v0  ;;  %763 = vmatprep.mubr.msk.bf16.mxu1 %vm975_vm0, %v974_v0  ;;  %v847_v4 = vld [vmem:[#allocation2 + $0x30] sm:$0xff]   ;;  %s180_s5 = scalar_select %p179_p6, %s1020_s16, 1  ;;  %v849_v6 = vld [vmem:[#allocation2 + $0x28] sm:$0xff]   ;;  %v850_v7 = vld [vmem:[#allocation2 + $0x60] sm:$0xff]  }
  0x27   : > { %728 = vmatpush3.bf16.msra.mxu0 %v844_v1  ;;  %748 = vmatpush3.bf16.msra.mxu1 %v845_v2  ;;  %v851_v8 = vld [vmem:[#allocation2 + $0x20] sm:$0xff]   ;;  %v852_v9 = vld [vmem:[#allocation2 + $0x58] sm:$0xff]   ;;  %v854_v13 = vld [vmem:[#allocation2 + $0x50] sm:$0xff]   ;;  %s176_s17 = sand.u32 1, %s961_s13   ;;  %s699_s20 = sshll.u32 %s1020_s16, 8 }
  0x28   : > { %729 = vmatprep.subr.bf16.mxu0 %v974_v0  ;;  %749 = vmatprep.subr.bf16.mxu1 %v974_v0  ;;  %s787_s6 = smul.u32 12, %s180_s5  ;;  %v853_v10 = vld [vmem:[#allocation2 + $0x18] sm:$0xff]   ;;  %v855_v16 = vld [vmem:[#allocation2 + $0x10] sm:$0xff]   ;;  %v856_v18 = vld [vmem:[#allocation2 + $0x48] sm:$0xff]   ;;  %s664_s19 = sshll.u32 %s176_s17, 4 }
  0x29   : > { %v857_v22 = vld [vmem:[#allocation2 + $0x8] sm:$0xff]   ;;  %v858_v23 = vld [vmem:[#allocation2 + $0x40] sm:$0xff]   ;;  %v862_v28 = vld [vmem:[#allocation2 + $0xb8] sm:$0xff]   ;;  %s178_s24 = scalar_lea.vmem [#allocation5], %s664_s19  ;;  %s1114_s28 = scalar_lea.hbm %s1161_s3, %s699_s20 }
  0x2a   : > { %s1082_s9 = scalar_lea.vmem %s1158_s0, %s787_s6  ;;  %v859_v26 = vld [vmem:[#allocation2] sm:$0xff]   ;;  %v863_v29 = vld [vmem:[#allocation2 + $0xb0] sm:$0xff]   ;;  %v864_v30 = vld [vmem:[#allocation2 + $0xa8] sm:$0xff]   ;;  %s584_s25 = sshll.u32 %s178_s24, 4  ;;  %s1116_s25 = int_to_ptr.vmem [resolvable:$true] %s584_s25 }
  0x2b   : > { %730 = vmatpush3.bf16.msra.mxu0 %v846_v3  ;;  %750 = vmatpush3.bf16.msra.mxu1 %v847_v4  ;;  %v185_v11 = vld [vmem:[%s1082_s9] sm:$0xf]  ;;  %v186_v12 = vld [vmem:[%s1082_s9 + $0x4] sm:$0xf]  ;;  %v866_v32 = vld [vmem:[#allocation2 + $0x98] sm:$0xff]   ;;  %s1118_s29 = scalar_lea.sflag [#allocation4], %s176_s17 }
  0x2c   : > { %731 = vmatprep.subr.bf16.mxu0 %v974_v0  ;;  %751 = vmatprep.subr.bf16.mxu1 %v974_v0  ;;  %v666_v14 = vcombine.low %v185_v11, %v186_v12  ;;  %v861_v15 = vld [vmem:[%s1082_s9 + $0x8] ss:$0 sps:$4 sm:$0x11]   ;;  %v865_v31 = vld [vmem:[#allocation2 + $0xa0] sm:$0xff]   ;;  %v867_v33 = vld [vmem:[#allocation2 + $0x90] sm:$0xff]   ;;  %s905_s16 = scalar_lea.vmem %s1116_s25, 256 }
  0x2d   : > { %v238_v21 = vshll.u32 %v861_v15, 16  ;;  %v422_v34 = vld [vmem:[%s1082_s9] sm:$0xe]  ;;  %v868_v35 = vld [vmem:[#allocation2 + $0x88] sm:$0xff]   ;;  %v445_v39 = vrot.slane %v861_v15, 1  ;;  %p906_p8 = scmp.ne.s32.totalorder %s1116_s25, %s905_s16  ;;  %s976_s30 = smov [#allocation5]  }
  0x2e   : > { %v233_v17 = vshll.u32 %v666_v14, 16  ;;  %v231_v19 = vshrl.u32 %v666_v14, 16  ;;  %v684_v36 = vcombine.low %v422_v34, %v186_v12  ;;  %v869_v37 = vld [vmem:[#allocation2 + $0x80] sm:$0xff]   ;;  %s909_s4 = sshll.u32 %s976_s30, 4  ;;  %s910_s4 = int_to_ptr.vmem [resolvable:$false] %s909_s4 }
  0x2f   : > { %732 = vmatpush3.bf16.msra.mxu0 %v848_v5  ;;  %752 = vmatpush3.bf16.msra.mxu1 %v849_v6  ;;  %v240_v25 = vrot.slane %v238_v21, 1  ;;  %v693_v51 = vld [vmem:[%s1160_s2] ss:$0 sm:$0xff]  ;;  %p907_p9 = pnand %p906_p8, %p1037_p5  ;;  %s911_s5 = scalar_lea.vmem %s910_s4, 512 }
  0x30   : > { %733 = vmatprep.subr.bf16.mxu0 %v974_v0  ;;  %753 = vmatprep.subr.bf16.mxu1 %v974_v0  ;;  %v235_v20 = vrot.slane %v233_v17, 1  ;;  %v444_v38 = vrot.slane %v684_v36, 1  ;;  %p912_p11 = scmp.lt.s32.totalorder %s1116_s25, %s910_s4  ;;  %p913_p12 = scmp.lt.s32.totalorder %s911_s5, %s905_s16 }
  0x31   : > { %p908_p10 = pneg %p907_p9 }
  0x32   : > { %v236_v24 = vor.u32 %v235_v20, %v231_v19  ;;  %v446_v40 = vsel %vm443_vm2, %v444_v38, %v445_v39  ;;  %p914_p13 = por %p913_p12, %p912_p11 }
  0x33   : > { %734 = vmatpush3.bf16.msra.mxu0 %v850_v7  ;;  %754 = vmatpush3.bf16.msra.mxu1 %v851_v8 }
  0x34   : > { %735 = vmatprep.subr.bf16.mxu0 %v974_v0  ;;  %755 = vmatprep.subr.bf16.mxu1 %v974_v0  ;;  %v241_v27 = vsel %vm229_vm1, %v236_v24, %v240_v25  ;;  %p915_p0 = pnand %p914_p13, %p908_p10 }
  0x37   : > { %736 = vmatpush3.bf16.msra.mxu0 %v852_v9  ;;  %756 = vmatpush3.bf16.msra.mxu1 %v853_v10 }
  0x38   : > { %737 = vmatprep.subr.bf16.mxu0 %v974_v0  ;;  %757 = vmatprep.subr.bf16.mxu1 %v974_v0 }
  0x3b   : > { %738 = vmatpush3.bf16.msra.mxu0 %v854_v13  ;;  %758 = vmatpush3.bf16.msra.mxu1 %v855_v16 }
  0x3c   : > { %739 = vmatprep.subr.bf16.mxu0 %v974_v0  ;;  %759 = vmatprep.subr.bf16.mxu1 %v974_v0 }
  0x3f   : > { %740 = vmatpush3.bf16.msra.mxu0 %v856_v18  ;;  %760 = vmatpush3.bf16.msra.mxu1 %v857_v22 }
  0x40   : > { %741 = vmatprep.subr.bf16.mxu0 %v974_v0  ;;  %761 = vmatprep.subr.bf16.mxu1 %v974_v0 }
  0x43   : > { %742 = vmatpush3.bf16.msra.mxu0 %v858_v23  ;;  %762 = vmatpush3.bf16.msra.mxu1 %v859_v26 }
  0x44   : > { %767 = vmatprep.subr.bf16.mxu0 %v974_v0 }
  0x46   : > { %744 = vmatmul.mubr.bf16.vlgmr.msra.gmra.mxu0 %v241_v27  ;;  %764 = vmatmul.mubr.bf16.vlgmr.msra.gmra.mxu1 %v666_v14 }
  0x47   : > { %768 = vmatpush3.bf16.msra.mxu0 %v862_v28  ;;  %783 = vmatprep.mubr.msk.bf16.mxu0 %vm975_vm0, %v974_v0 }
  0x48   : > { %769 = vmatprep.subr.bf16.mxu0 %v974_v0 }
  0x4b   : > { %770 = vmatpush3.bf16.msra.mxu0 %v863_v29 }
  0x4c   : > { %771 = vmatprep.subr.bf16.mxu0 %v974_v0 }
  0x4f   : > { %772 = vmatpush3.bf16.msra.mxu0 %v864_v30 }
  0x50   : > { %773 = vmatprep.subr.bf16.mxu0 %v974_v0 }
  0x53   : > { %774 = vmatpush3.bf16.msra.mxu0 %v865_v31 }
  0x54   : > { %775 = vmatprep.subr.bf16.mxu0 %v974_v0 }
  0x57   : > { %776 = vmatpush3.bf16.msra.mxu0 %v866_v32 }
  0x58   : > { %777 = vmatprep.subr.bf16.mxu0 %v974_v0 }
  0x5b   : > { %778 = vmatpush3.bf16.msra.mxu0 %v867_v33 }
  0x5c   : > { %779 = vmatprep.subr.bf16.mxu0 %v974_v0 }
  0x5f   : > { %780 = vmatpush3.bf16.msra.mxu0 %v868_v35 }
  0x60   : > { %781 = vmatprep.subr.bf16.mxu0 %v974_v0 }
  0x63   : > { %782 = vmatpush3.bf16.msra.mxu0 %v869_v37 }
  0x66   : > { %784 = vmatmul.mubr.bf16.vlgmr.msra.gmra.mxu0 %v446_v40 }
 0x106   : > { %v325_v41 = vpop.f32.mrf.mxu0  ;;  %v415_v42 = vpop.f32.mrf.mxu1 }
 0x107   : > { %v416_v49 = vadd.f32 %v415_v42, %v325_v41 }
 0x108   : > { %v745_v43 = vpop.f32.mrf.mxu0  ;;  %v765_v44 = vpop.f32.mrf.mxu1 }
 0x10a   : > { %v328_v45 = vpop.f32.mrf.mxu0  ;;  %v418_v46 = vpop.f32.mrf.mxu1 }
 0x10b   : > { %v419_v54 = vadd.f32 %v418_v46, %v328_v45 }
 0x10c   : > { %v746_v47 = vpop.f32.mrf.mxu0  ;;  %v766_v48 = vpop.f32.mrf.mxu1 }
 0x126   : > { %v530_v50 = vpop.f32.mrf.mxu0 }
 0x127   : > { %v537_v52 = vadd.f32 %v530_v50, %v416_v49 }
 0x128   : > { %v785_v53 = vpop.f32.mrf.mxu0 }
 0x129   : > { %v546_v55 = vadd.f32 %v693_v51, %v537_v52 }
 0x12a   : > { %v533_v56 = vpop.f32.mrf.mxu0 }
 0x12b   : > { %v548_v57 = vand.u32 2147483647, %v546_v55  ;;  %v538_v58 = vadd.f32 %v533_v56, %v419_v54  ;;  %vm560_vm3 = vcmp.ge.f32.partialorder %v546_v55, 0.0 }
 0x12c   : > { %v786_v59 = vpop.f32.mrf.mxu0 }
 0x12d   : > { %v550_v60 = vsub.f32 0.0, %v548_v57  ;;  %v547_v61 = vadd.f32 %v693_v51, %v538_v58 }
 0x12f   : > { %v552_v62 = vmul.f32 1.442695, %v550_v60  ;;  %v549_v63 = vand.u32 2147483647, %v547_v61  ;;  %vm561_vm4 = vcmp.ge.f32.partialorder %v547_v61, 0.0 }
 0x131   : > { %871 = vpow2.f32 %v552_v62  ;;  %v551_v0 = vsub.f32 0.0, %v549_v63 }
 0x133   : > { %v554_v1 = vmul.f32 1.442695, %v551_v0 }
 0x135   : > { %873 = vpow2.f32 %v554_v1 }
 0x13e   : > { %v872_v2 = vpop.eup %871 }
 0x13f   : > { %v556_v3 = vadd.f32 1.0, %v872_v2 }
 0x141   : > { %875 = vrcp.f32 %v556_v3 }
 0x142   : > { %v874_v4 = vpop.eup %873 }
 0x143   : > { %v557_v5 = vadd.f32 1.0, %v874_v4 }
 0x145   : > { %877 = vrcp.f32 %v557_v5 }
 0x14e   : > { %v876_v6 = vpop.eup %875 }
 0x14f   : > { %v562_v7 = vmul.f32 %v876_v6, %v872_v2 }
 0x151   : > { %v564_v8 = vsel %vm560_vm3, %v876_v6, %v562_v7 }
 0x152   : > { %v878_v9 = vpop.eup %877  ;;  %v566_v10 = vmul.f32 %v564_v8, %v546_v55 }
 0x153   : > { %v563_v11 = vmul.f32 %v878_v9, %v874_v4 }
 0x154   : > { %568 = vst [vmem:[%s178_s24] sm:$0xff] %v566_v10 }
 0x155   : > { %v565_v12 = vsel %vm561_vm4, %v878_v9, %v563_v11 }
 0x156   : > { %v567_v13 = vmul.f32 %v565_v12, %v547_v61 }
 0x158   : > { %569 = vst [vmem:[%s178_s24 + $0x8] sm:$0xff] %v567_v13 }
 0x159   : > { %918 = shalt.err (!%p915_p0)
}
 0x15a   : > { %s919_s6 = scalar_lea.hbm %s1114_s28, 256  ;;  %s923_s9 = scalar_lea.hbm %s1161_s3, 512 }
 0x15b   : > { %p920_p1 = scmp.ne.s32.totalorder %s1114_s28, %s919_s6  ;;  %p924_p4 = scmp.lt.s32.totalorder %s1114_s28, %s1161_s3 }
 0x15c   : > { %p925_p7 = scmp.lt.s32.totalorder %s923_s9, %s919_s6 }
 0x15d   : > { %p921_p2 = pnand %p920_p1, %p1037_p5 }
 0x15e   : > { %p926_p6 = por %p925_p7, %p924_p4 }
 0x15f   : > { %p922_p3 = pneg %p921_p2 }
 0x161   : > { %p927_p8 = pnand %p926_p6, %p922_p3 }
 0x163   : > { %930 = shalt.err (!%p927_p8)
}
 0x164   : > { %s977_s17 = smov 128   ;;  %s978_s19 = smov 8  }
 0x165   : > { %792 = dma.vmem_to_hbm [thread:$0]  (%p1037_p5), %s1116_s25, 256, %s1114_s28, %s1118_s29, %s977_s17, %s977_s17, %s978_s19  }
 0x166 PF: > { %p804_p9 = scmp.ge.s32.totalorder %s969_s15, 2  ;;  %s599_s20 = sand.u32 1, %s957_s12  }
 0x167   : > { %p1165_p10 = scmp.ne.s32.totalorder %s1163_s23, 0  ;;  %s600_s24 = scalar_lea.sflag [#allocation4], %s599_s20 }
 0x169   : > { %p799_p11 = pnand %p804_p9, %p1165_p10 }
 0x16b   : > { %p800_p12 = pneg %p799_p11 }
 0x16d   : > { %952 = dma.done.wait (%p800_p12), %s600_s24, 256  }
 0x16e   : > { %954 = vsyncadd (%p800_p12), %s600_s24, 4294967040  ;;  %p14_p13 = scmp.ge.s32.totalorder %s1024_s18, 4   ;;  %s1166_s12 = smov %s961_s13 }
 0x16f   : > { %s1167_s13 = smov %s965_s14  ;;  %s1168_s14 = smov %s1035_s21 }
 0x170   : > { %s1169_s15 = smov %s1024_s18  ;;  %16 = sbr.rel (!%p14_p13) target bundleno = 4 (0x4), region = 74 }
 0x175   :  { %605 = vsyncpa [#allocation3], 1 }
 0x176   :  { %607 = vsyncpa [#allocation3 + $0x1], 1 }
 0x177   :  { %608 = vsyncpa [#allocation4], 1 }
 0x178   :  { %610 = vsyncpa [#allocation4 + $0x1], 1 }

</bundles_post_ra>
